<compile_context>
chip_gen: v5e
topology: v5e:2x2
jax: 0.10.0
libtpu: 0.0.40
codegen_flags: <defaults>
</compile_context>

<pallas_src>
import numpy as np
import jax
import jax.numpy as jnp
from jax.experimental import pallas as pl
from jax.experimental.pallas import tpu as pltpu

HIDDEN = 64
OUT_DIM = 128
PAD_SIZE = 32   # PyTorch pads features to 32; we slice w1 instead (zeros contribute nothing)
BN_EPS = 1e-5
MAX_TM = 2048   # row-tile upper bound (sweepable; 2048 is safe on v5e's scoped VMEM)


def positional_encoding(max_len, d_model):
    position = jnp.arange(max_len, dtype=jnp.float32)[:, None]
    div_term = jnp.exp(
        jnp.arange(0, d_model, 2, dtype=jnp.float32) * (-np.log(10000.0) / d_model)
    )
    pe = jnp.zeros((max_len, d_model), jnp.float32)
    pe = pe.at[:, 0::2].set(jnp.sin(position * div_term))
    pe = pe.at[:, 1::2].set(jnp.cos(position * div_term))
    return pe[None]  # (1, max_len, d_model)


def _tokenizer_kernel(x_ref,
                      w1_ref, b1_ref,
                      w2_ref, b2_ref,
                      w3_ref, b3_ref,
                      o_ref):
    # layer 1: folded (fc64 + bn1 + fc11), then ReLU
    h = jnp.dot(x_ref[...], w1_ref[...], preferred_element_type=jnp.float32) + b1_ref[...]
    h = jnp.maximum(h, 0.0).astype(w2_ref.dtype)
    # layer 2: folded (fc2 + bn2 + fc3), then ReLU
    h = jnp.dot(h, w2_ref[...], preferred_element_type=jnp.float32) + b2_ref[...]
    h = jnp.maximum(h, 0.0).astype(w3_ref.dtype)
    # layer 3: fc4 (+ folded positional-encoding row)
    h = jnp.dot(h, w3_ref[...], preferred_element_type=jnp.float32) + b3_ref[...]
    o_ref[...] = h.astype(o_ref.dtype)


def init_params(key):
    """Deterministic synthetic parameters. Linear weights stored as (in, out)."""
    ks = jax.random.split(key, 16)

    def lin(k, fan_in, fan_out):
        kw, kb = jax.random.split(k)
        bound = 1.0 / np.sqrt(fan_in)
        w = jax.random.uniform(kw, (fan_in, fan_out), jnp.float32, -bound, bound)
        b = jax.random.uniform(kb, (1, fan_out), jnp.float32, -bound, bound)
        return w, b

    def bn(k, dim):
        kg, kb, km, kv = jax.random.split(k, 4)
        gamma = 1.0 + 0.1 * jax.random.normal(kg, (dim,), jnp.float32)
        beta = 0.1 * jax.random.normal(kb, (dim,), jnp.float32)
        mean = 0.1 * jax.random.normal(km, (dim,), jnp.float32)
        var = jnp.abs(jax.random.normal(kv, (dim,), jnp.float32)) + 0.5
        scale = gamma / jnp.sqrt(var + BN_EPS)
        shift = beta - mean * scale
        return scale[None, :], shift[None, :]

    p = {}
    p["w1"], p["b1"] = lin(ks[0], PAD_SIZE, HIDDEN)
    p["s1"], p["t1"] = bn(ks[1], HIDDEN)
    p["w11"], p["b11"] = lin(ks[2], HIDDEN, HIDDEN)
    p["w2"], p["b2"] = lin(ks[3], HIDDEN, 128)
    p["s2"], p["t2"] = bn(ks[4], 128)
    p["w3"], p["b3"] = lin(ks[5], 128, 128)
    p["w4"], p["b4"] = lin(ks[6], 128, OUT_DIM)
    return p


def _round_up(n, m):
    return ((n + m - 1) // m) * m


def tokenizer_forward(x, params, position_index=-1, max_len=3, max_tm=MAX_TM,
                      compute_dtype=jnp.float32, out_dtype=jnp.float32):
    input_dims = x.ndim
    d_in = x.shape[-1]
    assert d_in <= PAD_SIZE

    # No feature-pad copy: F.pad to 32 followed by @W1 == @W1[:d_in] (padded zeros).
    flat = x.astype(jnp.float32).reshape(-1, d_in)
    n_rows = flat.shape[0]

    # ---- constant folding (done once in the wrapper) --------------------------------
    # fc64 + bn1 + fc11 -> one (d_in, 64) linear
    w1 = params["w1"][:d_in, :] * params["s1"]
    b1 = params["b1"] * params["s1"] + params["t1"]
    w1f = w1 @ params["w11"]
    b1f = b1 @ params["w11"] + params["b11"]
    # fc2 + bn2 + fc3 -> one (64, 128) linear
    w2 = params["w2"] * params["s2"]
    b2 = params["b2"] * params["s2"] + params["t2"]
    w2f = w2 @ params["w3"]
    b2f = b2 @ params["w3"] + params["b3"]
    # fc4 (+ PE row broadcast-added to every token, as in the PyTorch module)
    w3f = params["w4"]
    b3f = params["b4"]
    if position_index >= 0:
        b3f = b3f + positional_encoding(max_len, OUT_DIM)[0, position_index][None, :]

    # bf16-native MXU option: weights/activations in compute_dtype, f32 accumulation,
    # biases kept in f32.
    w1f = w1f.astype(compute_dtype)
    w2f = w2f.astype(compute_dtype)
    w3f = w3f.astype(compute_dtype)
    flat = flat.astype(compute_dtype)

    # ---- balanced row tiles ----------------------------------------------------------
    # Pad rows only to a multiple of 8 (sublane), split into near-equal tiles, and use
    # >= 2 tiles whenever possible so v7x can shard the "parallel" axis over both TCs.
    n_pad8 = _round_up(max(n_rows, 8), 8)
    n_tiles = max(pl.cdiv(n_pad8, max_tm), 2 if n_pad8 >= 16 else 1)
    tm = _round_up(pl.cdiv(n_pad8, n_tiles), 8)
    n_pad = n_tiles * tm
    if n_pad != n_rows:
        flat = jnp.pad(flat, ((0, n_pad - n_rows), (0, 0)))

    weights = (w1f, b1f, w2f, b2f, w3f, b3f)
    # Constant params: block index never changes -> resident in VMEM, no re-DMA per step.
    const_spec = lambda a: pl.BlockSpec(a.shape, lambda i: (0, 0))

    out_flat = pl.pallas_call(
        _tokenizer_kernel,
        out_shape=jax.ShapeDtypeStruct((n_pad, OUT_DIM), out_dtype),
        grid_spec=pltpu.PrefetchScalarGridSpec(
            num_scalar_prefetch=0,
            grid=(n_tiles,),
            in_specs=[pl.BlockSpec((tm, d_in), lambda i: (i, 0))]
                     + [const_spec(w) for w in weights],
            out_specs=pl.BlockSpec((tm, OUT_DIM), lambda i: (i, 0)),
        ),
        compiler_params=pltpu.CompilerParams(
            dimension_semantics=("parallel",)),
    )(flat, *weights)

    out = out_flat[:n_rows]
    if input_dims == 3:
        out = out.reshape(x.shape[0], -1, OUT_DIM)
    elif input_dims == 2:
        out = out[:, None, :]
    return out


if __name__ == "__main__":
    key = jax.random.PRNGKey(0)
    kp, kx, kb = jax.random.split(key, 3)
    params = init_params(kp)

    # pure-JAX reference (faithful to the PyTorch eval-mode forward, no folding)
    def ref(x, p, position_index, max_len):
        d = x.shape[-1]
        xp = jnp.pad(x, [(0, 0)] * (x.ndim - 1) + [(0, PAD_SIZE - d)]).reshape(-1, PAD_SIZE)
        h = (xp @ p["w1"] + p["b1"]) * p["s1"] + p["t1"]
        h = jnp.maximum(h @ p["w11"] + p["b11"], 0.0)
        h = (h @ p["w2"] + p["b2"]) * p["s2"] + p["t2"]
        h = jnp.maximum(h @ p["w3"] + p["b3"], 0.0)
        h = h @ p["w4"] + p["b4"]
        if position_index >= 0:
            h = h + positional_encoding(max_len, OUT_DIM)[0, position_index][None, :]
        if x.ndim == 3:
            return h.reshape(x.shape[0], -1, OUT_DIM)
        return h[:, None, :]

    # 3-D input: (batch=2, seq=8, feat=16) -> output (2, 8, 128); 16 rows -> 2 tiles of 8
    x3 = jax.random.normal(kx, (2, 8, 16), jnp.float32)
    y3 = jax.block_until_ready(tokenizer_forward(x3, params, position_index=1, max_len=3))
    assert y3.shape == (2, 8, OUT_DIM)
    np.testing.assert_allclose(np.asarray(y3), np.asarray(ref(x3, params, 1, 3)),
                               rtol=2e-4, atol=2e-4)

    # 2-D input: (batch=2, feat=16) -> output (2, 1, 128); single 8-row tile
    x2 = x3[:, 0, :]
    y2 = jax.block_until_ready(tokenizer_forward(x2, params, position_index=-1))
    assert y2.shape == (2, 1, OUT_DIM)
    np.testing.assert_allclose(np.asarray(y2), np.asarray(ref(x2, params, -1, 3)),
                               rtol=2e-4, atol=2e-4)

    # larger 3-D input: (4, 300, 16) -> 1200 rows -> 2 balanced tiles of 600 (no row padding)
    xb = jax.random.normal(kb, (4, 300, 16), jnp.float32)
    yb = jax.block_until_ready(tokenizer_forward(xb, params, position_index=2, max_len=3))
    assert yb.shape == (4, 300, OUT_DIM)
    np.testing.assert_allclose(np.asarray(yb), np.asarray(ref(xb, params, 2, 3)),
                               rtol=2e-4, atol=2e-4)

    # optional bf16 compute path (MXU-native); looser tolerance for bf16 rounding
    yb16 = jax.block_until_ready(
        tokenizer_forward(xb, params, position_index=2, max_len=3,
                          compute_dtype=jnp.bfloat16))
    np.testing.assert_allclose(np.asarray(yb16), np.asarray(ref(xb, params, 2, 3)),
                               rtol=3e-2, atol=3e-2)

    print("KERNEL_OK")
</pallas_src>

<mosaic_0001>
module attributes {stable_mosaic.version = 11 : i64} {
  func.func @_tokenizer_kernel(%arg0: i32, %arg1: memref<8x16xf32, #tpu.memory_space<vmem>>, %arg2: memref<16x64xf32, #tpu.memory_space<vmem>>, %arg3: memref<1x64xf32, #tpu.memory_space<vmem>>, %arg4: memref<64x128xf32, #tpu.memory_space<vmem>>, %arg5: memref<1x128xf32, #tpu.memory_space<vmem>>, %arg6: memref<128x128xf32, #tpu.memory_space<vmem>>, %arg7: memref<1x128xf32, #tpu.memory_space<vmem>>, %arg8: memref<8x128xf32, #tpu.memory_space<vmem>>) attributes {dimension_semantics = [#tpu.dimension_semantics<parallel>], iteration_bounds = array<i64: 2>, scalar_prefetch = 0 : i64, scratch_operands = 0 : i64, tpu.core_type = #tpu.core_type<tc>, window_params = [{transform_indices = @transform_0, window_bounds = array<i64: 8, 16>}, {pipeline_mode = #tpu.pipeline_mode<synchronous>, transform_indices = @transform_1, window_bounds = array<i64: 16, 64>}, {pipeline_mode = #tpu.pipeline_mode<synchronous>, transform_indices = @transform_2, window_bounds = array<i64: 1, 64>}, {pipeline_mode = #tpu.pipeline_mode<synchronous>, transform_indices = @transform_3, window_bounds = array<i64: 64, 128>}, {pipeline_mode = #tpu.pipeline_mode<synchronous>, transform_indices = @transform_4, window_bounds = array<i64: 1, 128>}, {pipeline_mode = #tpu.pipeline_mode<synchronous>, transform_indices = @transform_5, window_bounds = array<i64: 128, 128>}, {pipeline_mode = #tpu.pipeline_mode<synchronous>, transform_indices = @transform_6, window_bounds = array<i64: 1, 128>}, {transform_indices = @transform_7, window_bounds = array<i64: 8, 128>}]} {
    %c0 = arith.constant 0 : index
    %c0_0 = arith.constant 0 : index
    %0 = vector.load %arg1[%c0, %c0_0] : memref<8x16xf32, #tpu.memory_space<vmem>>, vector<8x16xf32>
    %c0_1 = arith.constant 0 : index
    %c0_2 = arith.constant 0 : index
    %1 = vector.load %arg2[%c0_1, %c0_2] : memref<16x64xf32, #tpu.memory_space<vmem>>, vector<16x64xf32>
    %cst = arith.constant dense<0.000000e+00> : vector<8x64xf32>
    %2 = tpu.matmul %0, %1, %cst {dimension_numbers = #tpu.dot_dimension_numbers<[1], [0], [0], [1], [0, 0, 1, 1], [], []>} : vector<8x16xf32>, vector<16x64xf32>, vector<8x64xf32> -> vector<8x64xf32>
    %c0_3 = arith.constant 0 : index
    %c0_4 = arith.constant 0 : index
    %3 = vector.load %arg3[%c0_3, %c0_4] : memref<1x64xf32, #tpu.memory_space<vmem>>, vector<1x64xf32>
    %4 = vector.broadcast %3 : vector<1x64xf32> to vector<8x64xf32>
    %5 = arith.addf %2, %4 : vector<8x64xf32>
    %cst_5 = arith.constant 0.000000e+00 : f32
    %6 = vector.broadcast %cst_5 : f32 to vector<8x64xf32>
    %7 = arith.maximumf %5, %6 : vector<8x64xf32>
    %c0_6 = arith.constant 0 : index
    %c0_7 = arith.constant 0 : index
    %8 = vector.load %arg4[%c0_6, %c0_7] : memref<64x128xf32, #tpu.memory_space<vmem>>, vector<64x128xf32>
    %cst_8 = arith.constant dense<0.000000e+00> : vector<8x128xf32>
    %9 = tpu.matmul %7, %8, %cst_8 {dimension_numbers = #tpu.dot_dimension_numbers<[1], [0], [0], [1], [0, 0, 1, 1], [], []>} : vector<8x64xf32>, vector<64x128xf32>, vector<8x128xf32> -> vector<8x128xf32>
    %c0_9 = arith.constant 0 : index
    %c0_10 = arith.constant 0 : index
    %10 = vector.load %arg5[%c0_9, %c0_10] : memref<1x128xf32, #tpu.memory_space<vmem>>, vector<1x128xf32>
    %11 = vector.broadcast %10 : vector<1x128xf32> to vector<8x128xf32>
    %12 = arith.addf %9, %11 : vector<8x128xf32>
    %cst_11 = arith.constant 0.000000e+00 : f32
    %13 = vector.broadcast %cst_11 : f32 to vector<8x128xf32>
    %14 = arith.maximumf %12, %13 : vector<8x128xf32>
    %c0_12 = arith.constant 0 : index
    %c0_13 = arith.constant 0 : index
    %15 = vector.load %arg6[%c0_12, %c0_13] : memref<128x128xf32, #tpu.memory_space<vmem>>, vector<128x128xf32>
    %cst_14 = arith.constant dense<0.000000e+00> : vector<8x128xf32>
    %16 = tpu.matmul %14, %15, %cst_14 {dimension_numbers = #tpu.dot_dimension_numbers<[1], [0], [0], [1], [0, 0, 1, 1], [], []>} : vector<8x128xf32>, vector<128x128xf32>, vector<8x128xf32> -> vector<8x128xf32>
    %c0_15 = arith.constant 0 : index
    %c0_16 = arith.constant 0 : index
    %17 = vector.load %arg7[%c0_15, %c0_16] : memref<1x128xf32, #tpu.memory_space<vmem>>, vector<1x128xf32>
    %18 = vector.broadcast %17 : vector<1x128xf32> to vector<8x128xf32>
    %19 = arith.addf %16, %18 : vector<8x128xf32>
    %c0_17 = arith.constant 0 : index
    %c0_18 = arith.constant 0 : index
    %20 = vector.load %arg8[%c0_17, %c0_18] : memref<8x128xf32, #tpu.memory_space<vmem>>, vector<8x128xf32>
    tpu.vector_store %arg8[%c0_17, %c0_18], %19 {strides = array<i32>} : memref<8x128xf32, #tpu.memory_space<vmem>>, vector<8x128xf32>,
    return
  }
  func.func @transform_0(%arg0: i32) -> (i32, i32) {
    %c0_i32 = arith.constant 0 : i32
    %c0_i32_0 = arith.constant 0 : i32
    return %arg0, %c0_i32 : i32, i32
  }
  func.func @transform_1(%arg0: i32) -> (i32, i32) {
    %c0_i32 = arith.constant 0 : i32
    %c0_i32_0 = arith.constant 0 : i32
    %c0_i32_1 = arith.constant 0 : i32
    return %c0_i32, %c0_i32_0 : i32, i32
  }
  func.func @transform_2(%arg0: i32) -> (i32, i32) {
    %c0_i32 = arith.constant 0 : i32
    %c0_i32_0 = arith.constant 0 : i32
    %c0_i32_1 = arith.constant 0 : i32
    return %c0_i32, %c0_i32_0 : i32, i32
  }
  func.func @transform_3(%arg0: i32) -> (i32, i32) {
    %c0_i32 = arith.constant 0 : i32
    %c0_i32_0 = arith.constant 0 : i32
    %c0_i32_1 = arith.constant 0 : i32
    return %c0_i32, %c0_i32_0 : i32, i32
  }
  func.func @transform_4(%arg0: i32) -> (i32, i32) {
    %c0_i32 = arith.constant 0 : i32
    %c0_i32_0 = arith.constant 0 : i32
    %c0_i32_1 = arith.constant 0 : i32
    return %c0_i32, %c0_i32_0 : i32, i32
  }
  func.func @transform_5(%arg0: i32) -> (i32, i32) {
    %c0_i32 = arith.constant 0 : i32
    %c0_i32_0 = arith.constant 0 : i32
    %c0_i32_1 = arith.constant 0 : i32
    return %c0_i32, %c0_i32_0 : i32, i32
  }
  func.func @transform_6(%arg0: i32) -> (i32, i32) {
    %c0_i32 = arith.constant 0 : i32
    %c0_i32_0 = arith.constant 0 : i32
    %c0_i32_1 = arith.constant 0 : i32
    return %c0_i32, %c0_i32_0 : i32, i32
  }
  func.func @transform_7(%arg0: i32) -> (i32, i32) {
    %c0_i32 = arith.constant 0 : i32
    %c0_i32_0 = arith.constant 0 : i32
    return %arg0, %c0_i32 : i32, i32
  }
}

</mosaic_0001>

<bundles_post_ra>
// kernel: tpu_custom_call.1
= control target key start
LH: loop header
LB: loop body
LE: loop exit
PB: predicated region body
PF: predicated region fallthrough
CT: control target
= control target key end

     0   :  { %s1083_s0 = inlined_call_operand.hbm [shape: f32[16,16], index: 0, kind: input, shape index: {}]   ;;  %s1084_s1 = inlined_call_operand.hbm [shape: f32[16,64], index: 1, kind: input, shape index: {}]   ;;  %s1085_s2 = inlined_call_operand.vmem [shape: f32[1,64], index: 2, kind: input, shape index: {}]   ;;  %s1086_s3 = inlined_call_operand.hbm [shape: f32[64,128], index: 3, kind: input, shape index: {}]   ;;  %s1087_s4 = inlined_call_operand.vmem [shape: f32[1,128], index: 4, kind: input, shape index: {}]   ;;  %s1088_s5 = inlined_call_operand.hbm [shape: f32[128,128], index: 5, kind: input, shape index: {}]   ;;  %s1089_s6 = inlined_call_operand.vmem [shape: f32[1,128], index: 6, kind: input, shape index: {}]   ;;  %s1090_s7 = inlined_call_operand.hbm [shape: f32[16,128], index: 7, kind: output, shape index: {}]  }
   0x1   :  { %1091 = sst [smem:[#allocation15_spill]] %s1084_s1 }
   0x2   :  { %12 = vsyncpa [#allocation3], 0 }
   0x3   :  { %14 = vsyncpa [#allocation3 + $0x1], 0 }
   0x4   :  { %15 = vsyncpa [#allocation6], 0 }
   0x5   :  { %16 = vsyncpa [#allocation9], 0 }
   0x6   :  { %17 = vsyncpa [#allocation4], 0 }
   0x7   :  { %19 = vsyncpa [#allocation4 + $0x1], 0  ;;  %s914_s24 = smov 0   ;;  %s916_s25 = smov 0  }
   0x8   :  { %s918_s26 = smov 0   ;;  %s920_s27 = smov 0  }
   0x9 LB: > { %s1092_s1 = sld [smem:[#allocation15_spill]]  ;;  %s938_s8 = sadd.s32 4294967295, %s867_s27   ;;  %s867_s27 = sphi %s920_s27, %s1103_s27   ;;  %s863_s26 = sphi %s918_s26, %s1102_s26   ;;  %s859_s25 = sphi %s916_s25, %s1101_s25   ;;  %s855_s24 = sphi %s914_s24, %s1100_s24  }
   0xa   : > { %p572_p0 = scmp.ge.s32.totalorder %s867_s27, 1  ;;  %p46_p1 = scmp.eq.s32.totalorder %s938_s8, 0 }
   0xb   : > { %p208_p2 = scmp.lt.s32.totalorder %s867_s27, 3  ;;  %s869_s10 = smov [#allocation5]  }
   0xc   : > { %s221_s11 = sshll.u32 %s869_s10, 4  ;;  %s236_s14 = sshll.u32 %s1086_s3, 4  ;;  %s222_s11 = int_to_ptr.vmem [resolvable:$true] %s221_s11  ;;  %s237_s14 = int_to_ptr.hbm [resolvable:$true] %s236_s14 }
   0xd   : > { %p943_p3 = pnand %p572_p0, %p208_p2  ;;  %s253_s18 = sshll.u32 %s1088_s5, 4  ;;  %s254_s18 = int_to_ptr.hbm [resolvable:$true] %s253_s18 }
   0xe   : > { %s870_s19 = smov [#allocation7]   ;;  %s871_s21 = smov 128  }
   0xf   : > { %s219_s30 = sshll.u32 %s1092_s1, 4  ;;  %p607_p4 = pneg %p943_p3  ;;  %s220_s30 = int_to_ptr.hbm [resolvable:$true] %s219_s30 }
  0x10   : > { %s238_s20 = sshll.u32 %s870_s19, 4  ;;  %s872_s22 = smov 8   ;;  %s239_s20 = int_to_ptr.vmem [resolvable:$true] %s238_s20 }
  0x11   : > { %p955_p6 = pnand %p607_p4, %p46_p1  ;;  %s873_s23 = smov [#allocation8]  }
  0x12   : > { %s255_s28 = sshll.u32 %s873_s23, 4  ;;  %s571_s29 = sadd.s32 4294967294, %s867_s27   ;;  %s256_s28 = int_to_ptr.vmem [resolvable:$true] %s255_s28 }
  0x13   : > { %610 = dma.hbm_to_vmem [thread:$0]  (!%p955_p6), %s220_s30, 256, %s222_s11, [#allocation6], %s871_s21, %s871_s21, %s872_s22  }
  0x14   : > { %613 = dma.hbm_to_vmem [thread:$0]  (!%p955_p6), %s237_s14, 1024, %s239_s20, [#allocation6], %s871_s21, %s871_s21, %s872_s22  }
  0x15   : > { %616 = dma.hbm_to_vmem [thread:$0]  (!%p955_p6), %s254_s18, 2048, %s256_s28, [#allocation9], %s871_s21, %s871_s21, %s872_s22  }
  0x16   : > { %s970_s10 = sadd.s32 1, %s867_s27   ;;  %s32_s12 = sadd.s32 1, %s863_s26 }
  0x17   : > { %s29_s30 = ssub.s32 %s867_s27, %s970_s10  ;;  %p39_p7 = scmp.ne.s32.totalorder %s863_s26, %s859_s25 }
  0x18   : > { %p30_p8 = scmp.eq.s32.totalorder %s29_s30, 0  ;;  %p40_p9 = scmp.eq.s32.totalorder %s867_s27, 0 }
  0x19   : > { %p45_p10 = scmp.ne.s32.totalorder %s859_s25, %s855_s24  ;;  %p195_p11 = scmp.eq.s32.totalorder %s938_s8, 1 }
  0x1a   : > { %s982_s11 = scalar_select %p30_p8, %s863_s26, %s32_s12  }
  0x1b   : > { %p986_p12 = por %p46_p1, %p45_p10  ;;  %p990_p13 = por %p195_p11, %p39_p7 }
  0x1c   : > { %p201_p0 = scmp.eq.s32.totalorder %s571_s29, 1  ;;  %p41_p2 = por %p40_p9, %p39_p7 }
  0x1d   : > { %s272_s15 = sand.u32 1, %s863_s26   ;;  %p628_p6 = scmp.lt.s32.totalorder %s867_s27, 2 }
  0x1e   : > { %p995_p4 = por %p201_p0, %p45_p10  ;;  %s577_s17 = sshll.u32 %s272_s15, 3 }
  0x1f   : > { %s578_s18 = sshll.u32 %s867_s27, 3  ;;  %s276_s23 = scalar_lea.vmem [#allocation2], %s577_s17 }
  0x20   : > { %s280_s21 = scalar_lea.hbm %s1083_s0, %s578_s18  ;;  %s284_s28 = sshll.u32 %s276_s23, 4  ;;  %s285_s28 = int_to_ptr.vmem [resolvable:$true] %s284_s28 }
  0x21   : > { %s282_s22 = sshll.u32 %s280_s21, 4  ;;  %p1004_p8 = pnand %p628_p6, %p41_p2  ;;  %s283_s22 = int_to_ptr.hbm [resolvable:$true] %s282_s22 }
  0x22   : > { %s273_s12 = scalar_lea.sflag [#allocation3], %s272_s15  ;;  %s763_s30 = sshra.s32 %s283_s22, 4  ;;  %s764_s30 = int_to_ptr.hbm [resolvable:$true] %s763_s30 }
  0x23   : > { %s765_s1 = scalar_lea.hbm %s764_s30, 8  ;;  %p767_p9 = pneg %p1004_p8 }
  0x24   : > { %p766_p7 = scmp.ne.s32.totalorder %s764_s30, %s765_s1  ;;  %s770_s17 = scalar_lea.hbm %s1083_s0, 16 }
  0x25   : > { %p771_p0 = scmp.lt.s32.totalorder %s764_s30, %s1083_s0  ;;  %p772_p2 = scmp.lt.s32.totalorder %s770_s17, %s765_s1 }
  0x26   : > { %p768_p10 = pnand %p767_p9, %p766_p7 }
  0x27   : > { %p773_p6 = por %p772_p2, %p771_p0 }
  0x28   : > { %p769_p11 = pneg %p768_p10 }
  0x2a   : > { %p774_p5 = pnand %p773_p6, %p769_p11 }
  0x2c   : > { %777 = shalt.err (!%p774_p5)
}
  0x2d   : > { %620 = dma.hbm_to_vmem [thread:$0]  (!%p1004_p8), %s283_s22, 128, %s285_s28, %s273_s12  }
  0x2e   : > { %293 = sbr.rel (%p943_p3) target bundleno = 457 (0x1c9), region = 48  ;;  %s1021_s15 = sand.u32 (!%p943_p3), 1, %s859_s25  }
  0x2f   : > { %s580_s23 = sshll.u32 (!%p943_p3), %s1021_s15, 3  ;;  %s296_s18 = scalar_lea.sflag (!%p943_p3), [#allocation3], %s1021_s15 }
  0x30   : > { %s299_s1 = scalar_lea.vmem (!%p943_p3), [#allocation2], %s580_s23 }
  0x33   : > { %838 = dma.done.wait (%p986_p12), %s296_s18, 128  }
  0x34   : > { %840 = vsyncadd (%p986_p12), %s296_s18, 4294967168 }
  0x35   : > { %842 = dma.done.wait (%p46_p1), [#allocation6], 1280  }
  0x36   : > { %844 = vsyncadd (%p46_p1), [#allocation6], 4294966016 }
  0x37   : > { %846 = dma.done.wait (%p46_p1), [#allocation9], 2048  }
  0x38   : > { %848 = vsyncadd (%p46_p1), [#allocation9], 4294965248  ;;  %v348_v0 = vld [vmem:[#allocation5 + $0x8] sm:$0xff]  ;;  %v347_v1 = vld [vmem:[#allocation5] sm:$0xff]  ;;  %vm353_vm0 = vcmask 130048   ;;  %vm390_vm1 = vcmask 523264  }
  0x39   : > { %371 = vmatpush.msra.mxu0 %v348_v0  ;;  %v346_v2 = vld [vmem:[%s299_s1] sm:$0xff]  ;;  %v385_v3 = vld [vmem:[#allocation7 + $0x38] sm:$0xff]  ;;  %v384_v4 = vld [vmem:[#allocation7 + $0x30] sm:$0xff]  ;;  %s588_s29 = sshll.u32 %s938_s8, 3  ;;  %s345_s21 = scalar_lea.vmem [#allocation10], %s580_s23 }
  0x3a   : > { %402 = vmatpush.msra.mxu1 %v385_v3  ;;  %v383_v5 = vld [vmem:[#allocation7 + $0x28] sm:$0xff]  ;;  %v382_v6 = vld [vmem:[#allocation7 + $0x20] sm:$0xff]  ;;  %v381_v7 = vld [vmem:[#allocation7 + $0x18] sm:$0xff]  ;;  %s467_s19 = scalar_lea.hbm %s1090_s7, %s588_s29  ;;  %s469_s18 = sshll.u32 %s345_s21, 4  ;;  %s470_s18 = int_to_ptr.vmem [resolvable:$true] %s469_s18 }
  0x3b   : > { %372 = vmatpush.msra.mxu0 %v347_v1  ;;  %v380_v8 = vld [vmem:[#allocation7 + $0x10] sm:$0xff]  ;;  %v379_v9 = vld [vmem:[#allocation7 + $0x8] sm:$0xff]  ;;  %v378_v10 = vld [vmem:[#allocation7] sm:$0xff]  ;;  %s471_s1 = sshll.u32 %s467_s19, 4  ;;  %s457_s9 = scalar_lea.sflag [#allocation4], %s1021_s15  ;;  %s472_s1 = int_to_ptr.hbm [resolvable:$true] %s471_s1 }
  0x3c   : > { %585 = vmatmul.msk.f32.vlgmr.msra.gmra.mxu0 %vm353_vm0, %v346_v2  ;;  %403 = vmatpush.msra.mxu1 %v384_v4  ;;  %v430_v11 = vld [vmem:[#allocation8 + $0x78] sm:$0xff]  ;;  %v429_v12 = vld [vmem:[#allocation8 + $0x70] sm:$0xff]  ;;  %v428_v13 = vld [vmem:[#allocation8 + $0x68] sm:$0xff]  ;;  %s807_s8 = sshra.s32 %s472_s1, 4  ;;  %s813_s29 = scalar_lea.hbm %s1090_s7, 16  ;;  %s808_s8 = int_to_ptr.hbm [resolvable:$true] %s807_s8 }
  0x3d   : > { %435 = vmatpush.msra.mxu2 %v430_v11  ;;  %v427_v14 = vld [vmem:[#allocation8 + $0x60] sm:$0xff]  ;;  %v426_v15 = vld [vmem:[#allocation8 + $0x58] sm:$0xff]  ;;  %v425_v16 = vld [vmem:[#allocation8 + $0x50] sm:$0xff]  ;;  %s809_s13 = scalar_lea.hbm %s808_s8, 8  ;;  %p814_p12 = scmp.lt.s32.totalorder %s808_s8, %s1090_s7 }
  0x3e   : > { %404 = vmatpush.msra.mxu1 %v383_v5  ;;  %v424_v17 = vld [vmem:[#allocation8 + $0x48] sm:$0xff]  ;;  %v423_v18 = vld [vmem:[#allocation8 + $0x40] sm:$0xff]  ;;  %v422_v19 = vld [vmem:[#allocation8 + $0x38] sm:$0xff]  ;;  %p810_p1 = scmp.ne.s32.totalorder %s808_s8, %s809_s13  ;;  %p815_p8 = scmp.lt.s32.totalorder %s813_s29, %s809_s13 }
  0x3f   : > { %436 = vmatpush.msra.mxu2 %v429_v12  ;;  %v421_v20 = vld [vmem:[#allocation8 + $0x30] sm:$0xff]  ;;  %v420_v21 = vld [vmem:[#allocation8 + $0x28] sm:$0xff]  ;;  %v419_v22 = vld [vmem:[#allocation8 + $0x20] sm:$0xff] }
  0x40   : > { %405 = vmatpush.msra.mxu1 %v382_v6  ;;  %v418_v23 = vld [vmem:[#allocation8 + $0x18] sm:$0xff]  ;;  %v670_v24 = vld [vmem:[%s1085_s2] ss:$0 sm:$0xff]  ;;  %v417_v28 = vld [vmem:[#allocation8 + $0x10] sm:$0xff]  ;;  %p811_p3 = pnand %p810_p1, %p990_p13  ;;  %p816_p7 = por %p815_p8, %p814_p12 }
  0x41   : > { %437 = vmatpush.msra.mxu2 %v428_v13  ;;  %v416_v29 = vld [vmem:[#allocation8 + $0x8] sm:$0xff]  ;;  %v415_v30 = vld [vmem:[#allocation8] sm:$0xff] }
  0x42   : > { %406 = vmatpush.msra.mxu1 %v381_v7  ;;  %v671_v31 = vld [vmem:[%s1087_s4] ss:$0 sm:$0xff]  ;;  %p812_p5 = pneg %p811_p3 }
  0x43   : > { %438 = vmatpush.msra.mxu2 %v427_v14  ;;  %v672_v35 = vld [vmem:[%s1089_s6] ss:$0 sm:$0xff] }
  0x44   : > { %407 = vmatpush.msra.mxu1 %v380_v8  ;;  %p817_p9 = pnand %p816_p7, %p812_p5 }
  0x45   : > { %439 = vmatpush.msra.mxu2 %v426_v15 }
  0x46   : > { %408 = vmatpush.msra.mxu1 %v379_v9 }
  0x47   : > { %440 = vmatpush.msra.mxu2 %v425_v16 }
  0x48   : > { %409 = vmatpush.msra.mxu1 %v378_v10 }
  0x49   : > { %441 = vmatpush.msra.mxu2 %v424_v17 }
  0x4b   : > { %442 = vmatpush.msra.mxu2 %v423_v18 }
  0x4d   : > { %443 = vmatpush.msra.mxu2 %v422_v19 }
  0x4f   : > { %444 = vmatpush.msra.mxu2 %v421_v20 }
  0x51   : > { %445 = vmatpush.msra.mxu2 %v420_v21 }
  0x53   : > { %446 = vmatpush.msra.mxu2 %v419_v22 }
  0x55   : > { %447 = vmatpush.msra.mxu2 %v418_v23 }
  0x57   : > { %448 = vmatpush.msra.mxu2 %v417_v28 }
  0x59   : > { %449 = vmatpush.msra.mxu2 %v416_v29 }
  0x5b   : > { %450 = vmatpush.msra.mxu2 %v415_v30 }
  0xb9   : > { %v374_v25 = vpop.f32.mrf.mxu0 }
  0xba   : > { %v375_v26 = vadd.f32 %v670_v24, %v374_v25 }
  0xbc   : > { %v377_v27 = vmax.f32 %v375_v26, 0.0 }
  0xbe   : > { %586 = vmatmul.msk.f32.vlgmr.msra.gmra.mxu1 %vm390_vm1, %v377_v27 }
 0x13b   : > { %v411_v32 = vpop.f32.mrf.mxu1 }
 0x13c   : > { %v412_v33 = vadd.f32 %v671_v31, %v411_v32 }
 0x13e   : > { %v414_v34 = vmax.f32 %v412_v33, 0.0 }
 0x140   : > { %451 = vmatmul.f32.vlgmr.msra.gmra.mxu2 %v414_v34 }
 0x1c3   : > { %v452_v36 = vpop.f32.mrf.mxu2 }
 0x1c4   : > { %v453_v37 = vadd.f32 %v672_v35, %v452_v36 }
 0x1c6   : > { %455 = vst [vmem:[%s345_s21] sm:$0xff] %v453_v37 }
 0x1c7   : > { %820 = shalt.err (!%p817_p9)
}
 0x1c8   : > { %605 = dma.vmem_to_hbm [thread:$0]  (%p990_p13), %s470_s18, 128, %s472_s1, %s457_s9  }
 0x1c9 PF: > { %s483_s15 = sand.u32 1, %s855_s24   ;;  %p1099_p10 = scmp.ge.s32.totalorder %s867_s27, 2 }
 0x1ca   : > { %s484_s30 = scalar_lea.sflag [#allocation4], %s483_s15 }
 0x1cb   : > { %p622_p11 = pnand %p1099_p10, %p995_p4 }
 0x1cd   : > { %p623_p0 = pneg %p622_p11 }
 0x1cf   : > { %850 = dma.done.wait (%p623_p0), %s484_s30, 128  }
 0x1d0   : > { %852 = vsyncadd (%p623_p0), %s484_s30, 4294967168  ;;  %p22_p2 = scmp.ge.s32.totalorder %s970_s10, 4   ;;  %s1100_s24 = smov %s859_s25 }
 0x1d1   : > { %s1101_s25 = smov %s863_s26  ;;  %s1102_s26 = smov %s982_s11 }
 0x1d2   : > { %s1103_s27 = smov %s970_s10  ;;  %24 = sbr.rel (!%p22_p2) target bundleno = 9 (0x9), region = 105 }
 0x1d7   :  { %490 = vsyncpa [#allocation3], 1 }
 0x1d8   :  { %492 = vsyncpa [#allocation3 + $0x1], 1 }
 0x1d9   :  { %493 = vsyncpa [#allocation6], 1 }
 0x1da   :  { %494 = vsyncpa [#allocation9], 1 }
 0x1db   :  { %495 = vsyncpa [#allocation4], 1 }
 0x1dc   :  { %497 = vsyncpa [#allocation4 + $0x1], 1 }

</bundles_post_ra>
